<compile_context>
chip_gen: v7x
topology: tpu7x:2x2x1
jax: 0.10.0
libtpu: 0.0.40
codegen_flags: <defaults>
</compile_context>

<pallas_src>
import functools

import jax
import jax.numpy as jnp
from jax.experimental import pallas as pl
from jax.experimental.pallas import tpu as pltpu

IGNORE_INDEX = 5555  # ignore_index used by the original PyTorch module.


def _round_up(x, m):
    return ((x + m - 1) // m) * m


def _oim_kernel(x_ref, w_ref, tgt_ref, wv_ref, *refs,
                tile_c, c_actual, needs_mask, emit_logits, exp_dtype):
    """One (N-tile, C-tile) grid step of the OIM cross-entropy forward.

    x_ref   : (tile_n, D)   features (scalar already folded into w, pre-cast)
    w_ref   : (D, tile_c)   scalar-folded class table, lane-dense on C
    tgt_ref : (tile_n, 1)   int32 target column (-1 => ignored, never matches)
    wv_ref  : (tile_n, 1)   valid * class_weight[target]
    outputs : [logits?, num, den]; scratch: m, l, t (online LSE state).
    """
    if emit_logits:
        logits_ref, num_ref, den_ref, m_sc, l_sc, t_sc = refs
    else:
        num_ref, den_ref, m_sc, l_sc, t_sc = refs

    ci = pl.program_id(1)
    last = pl.num_programs(1) - 1

    @pl.when(ci == 0)
    def _init():
        m_sc[...] = jnp.full(m_sc.shape, -jnp.inf, m_sc.dtype)
        l_sc[...] = jnp.zeros_like(l_sc)
        t_sc[...] = jnp.zeros_like(t_sc)

    # Straight MXU feed: no per-step scale or cast (hoisted to the wrapper).
    logits = jax.lax.dot_general(
        x_ref[...], w_ref[...],
        dimension_numbers=(((1,), (0,)), ((), ())),
        preferred_element_type=jnp.float32)                # (tile_n, tile_c)

    if emit_logits:
        logits_ref[...] = logits.astype(logits_ref.dtype)

    # (1, tile_c) global column ids for this tile; broadcast against targets.
    col = ci * tile_c + jax.lax.broadcasted_iota(jnp.int32, (1, tile_c), 1)

    # Target-logit extraction without a one-hot matrix.  Ignored rows carry -1
    # which never equals a (non-negative) column id, so they accumulate 0.
    t_sc[...] += jnp.sum(jnp.where(col == tgt_ref[...], logits, 0.0),
                         axis=-1, keepdims=True)

    def lse_update(vals):
        m_prev = m_sc[...]
        m_new = jnp.maximum(m_prev, jnp.max(vals, axis=-1, keepdims=True))
        alpha = jnp.exp(m_prev - m_new)
        # Optional bf16 exp (v6e/v7x EUP bf16 path); row-sum accumulates in f32.
        e = jnp.exp((vals - m_new).astype(exp_dtype)).astype(jnp.float32)
        l_sc[...] = alpha * l_sc[...] + jnp.sum(e, axis=-1, keepdims=True)
        m_sc[...] = m_new

    if needs_mask:
        # Only the last C tile can see out-of-range (unspecified) weight
        # columns, so only that step pays for the compare+select.
        @pl.when(ci != last)
        def _interior():
            lse_update(logits)

        @pl.when(ci == last)
        def _boundary():
            lse_update(jnp.where(col < c_actual, logits, -jnp.inf))
    else:
        lse_update(logits)

    @pl.when(ci == last)
    def _finalize():
        lse = m_sc[...] + jnp.log(l_sc[...])
        nll = lse - t_sc[...]                               # (tile_n, 1)
        wv = wv_ref[...]
        # TODO(synk): num/den are lane-width-1 stores; could be fused or
        # tile-reduced, but they are a negligible fraction of HBM traffic.
        num_ref[...] = wv * nll
        den_ref[...] = wv


def oim_loss(inputs, targets, lut, cq, class_weight, scalar=30.0, *,
             w_dtype=jnp.float32, logits_dtype=jnp.float32,
             exp_dtype=jnp.float32, return_logits=True,
             tile_n=256, tile_c=2048):
    """Forward of OIMLoss: returns (loss, scaled_logits_or_None)."""
    N, D = inputs.shape
    L = lut.shape[0]
    Q = cq.shape[0]
    C = L + Q

    # Tile clamping.  tile_n is capped at ~ceil(N/2) (sublane-rounded) so the
    # "parallel" N axis gets >=2 grid steps whenever N > 8 (both v7x TCs fed;
    # neutral on single-TC v5e/v6e).  tile_c stays a multiple of 128 lanes.
    half_n = max(8, _round_up((N + 1) // 2, 8))
    tile_n = max(8, min(_round_up(tile_n, 8), half_n))
    tile_c = _round_up(min(tile_c, _round_up(C, 128)), 128)
    n_grid = pl.cdiv(N, tile_n)
    c_grid = pl.cdiv(C, tile_c)
    needs_mask = (C % tile_c) != 0

    # Fold `scalar` into the class table during the concat/transpose/cast copy
    # the wrapper performs anyway (scalar*(x@W.T) == x@(scalar*W).T); store it
    # (D, C) so weight tiles are lane-dense on the class axis.  No padding:
    # Pallas masks boundary blocks and the kernel masks the LSE columns.
    # TODO(synk): in production lut/cq are persistent buffers; keep them stored
    # pre-concatenated / pre-scaled (and bf16) to skip this copy per step.
    w = (jnp.concatenate([lut, cq], axis=0).T * scalar).astype(w_dtype)
    x = inputs.astype(w_dtype)

    # PyTorch semantics: targets<0 -> 5555, ignore_index=5555.  In-kernel the
    # ignored sentinel is -1 (never collides with a real column id).
    tgt = targets.astype(jnp.int32)
    ignored = jnp.logical_or(tgt < 0, tgt == IGNORE_INDEX)
    y_safe = jnp.where(ignored, 0, jnp.clip(tgt, 0, C - 1))
    wv = jnp.where(ignored, 0.0, class_weight.astype(jnp.float32)[y_safe])
    tgt2d = jnp.where(ignored, -1, tgt).reshape(N, 1)
    wv2d = wv.reshape(N, 1)

    in_specs = [
        pl.BlockSpec((tile_n, D), lambda ni, ci: (ni, 0)),        # x
        pl.BlockSpec((D, tile_c), lambda ni, ci: (0, ci)),        # weights (D,C)
        pl.BlockSpec((tile_n, 1), lambda ni, ci: (ni, 0)),        # targets
        pl.BlockSpec((tile_n, 1), lambda ni, ci: (ni, 0)),        # wv
    ]
    out_specs = [
        pl.BlockSpec((tile_n, 1), lambda ni, ci: (ni, 0)),        # num
        pl.BlockSpec((tile_n, 1), lambda ni, ci: (ni, 0)),        # den
    ]
    out_shape = [
        jax.ShapeDtypeStruct((N, 1), jnp.float32),
        jax.ShapeDtypeStruct((N, 1), jnp.float32),
    ]
    if return_logits:
        out_specs = [pl.BlockSpec((tile_n, tile_c),
                                  lambda ni, ci: (ni, ci))] + out_specs
        out_shape = [jax.ShapeDtypeStruct((N, C), logits_dtype)] + out_shape

    w_bytes = jnp.dtype(w_dtype).itemsize
    lg_bytes = jnp.dtype(logits_dtype).itemsize if return_logits else 0

    # Rough double-buffered VMEM footprint; only raise the scoped limit when
    # needed, capped at v7x's 64 MiB physical VMEM (shrink tiles / use bf16
    # there instead of asking for more).
    vmem_est = (2 * D * tile_c * w_bytes + 2 * tile_n * tile_c * lg_bytes
                + 2 * tile_n * D * w_bytes + tile_n * tile_c * 4
                + 16 * tile_n * 4)
    vmem_limit = None
    if vmem_est > 28 * 1024 * 1024:
        vmem_limit = int(min(vmem_est * 5 // 4, 64 * 1024 * 1024))

    cost = pl.CostEstimate(
        flops=2 * N * C * D,
        transcendentals=N * C,
        bytes_accessed=(N * D * w_bytes + C * D * w_bytes
                        + N * C * lg_bytes + 4 * N * 4))

    kernel = functools.partial(
        _oim_kernel, tile_c=tile_c, c_actual=C, needs_mask=needs_mask,
        emit_logits=return_logits, exp_dtype=exp_dtype)

    outs = pl.pallas_call(
        kernel,
        grid=(n_grid, c_grid),
        in_specs=in_specs,
        out_specs=out_specs,
        out_shape=out_shape,
        scratch_shapes=[pltpu.VMEM((tile_n, 1), jnp.float32)] * 3,
        compiler_params=pltpu.CompilerParams(
            dimension_semantics=("parallel", "arbitrary"),
            vmem_limit_bytes=vmem_limit),
        cost_estimate=cost,
    )(x, w, tgt2d, wv2d)

    if return_logits:
        logits_out, num, den = outs
    else:
        num, den = outs
        logits_out = None

    # Weighted mean over non-ignored samples (F.cross_entropy, size_average).
    # Guard the all-ignored / zero-weight case (PyTorch yields NaN there;
    # documented, intentional deviation).
    den_sum = jnp.sum(den)
    loss = jnp.where(den_sum > 0.0,
                     jnp.sum(num) / jnp.maximum(den_sum, 1e-12),
                     0.0)
    return loss, logits_out


def _reference(inputs, targets, lut, cq, class_weight, scalar):
    """Pure-JAX f32 reference of the PyTorch forward."""
    tgt = jnp.where(targets < 0, IGNORE_INDEX, targets)
    logits = scalar * (inputs @ jnp.concatenate([lut, cq], axis=0).T)
    lsm = jax.nn.log_softmax(logits, axis=-1)
    valid = (tgt != IGNORE_INDEX).astype(jnp.float32)
    y = jnp.where(tgt == IGNORE_INDEX, 0, tgt)
    nll = -jnp.take_along_axis(lsm, y[:, None], axis=1)[:, 0]
    wy = class_weight[y]
    return jnp.sum(valid * wy * nll) / jnp.sum(valid * wy), logits


if __name__ == "__main__":
    # Small synthetic config (num_features=32, num_labeled_pids=120, cq_size=137).
    # C = 257 is deliberately NOT 128-aligned and N = 10 is NOT a tile multiple,
    # so both the boundary-column LSE mask and Pallas's boundary-block masking
    # on the N axis are exercised.
    N, D = 10, 32
    L, Q = 120, 137
    SCALAR = 30.0

    key = jax.random.PRNGKey(0)
    k1, k2, k3 = jax.random.split(key, 3)

    inputs = jax.random.normal(k1, (N, D), dtype=jnp.float32)
    inputs = inputs / jnp.linalg.norm(inputs, axis=1, keepdims=True)
    lut = jax.random.normal(k2, (L, D), dtype=jnp.float32)
    lut = lut / jnp.linalg.norm(lut, axis=1, keepdims=True)
    cq = jax.random.normal(k3, (Q, D), dtype=jnp.float32)
    cq = cq / jnp.linalg.norm(cq, axis=1, keepdims=True)

    # weight = cat([ones(L), zeros(Q)])
    class_weight = jnp.concatenate([jnp.ones((L,), jnp.float32),
                                    jnp.zeros((Q,), jnp.float32)])

    # Labeled pids, unlabeled (-1 -> ignored) and one queue id (>= L, class
    # weight 0, contributes nothing -- same as PyTorch weighted CE).
    targets = jnp.array([3, 17, -1, 42, 0, -1, 119, 123, 56, -1],
                        dtype=jnp.int32)

    ref_loss, ref_logits = _reference(inputs, targets, lut, cq,
                                      class_weight, SCALAR)

    # 1) f32 weights, f32 softmax, logits returned.  tile_c=128 -> 3 C steps
    # (online LSE + boundary masking) and tile_n=8 -> 2 N steps (one boundary
    # block on the N axis).
    loss32, logits32 = oim_loss(inputs, targets, lut, cq, class_weight,
                                scalar=SCALAR, w_dtype=jnp.float32,
                                tile_n=8, tile_c=128)
    jax.block_until_ready((loss32, logits32))
    assert logits32.shape == (N, L + Q)
    assert jnp.allclose(logits32, ref_logits, rtol=1e-3, atol=5e-3), "f32 logits"
    assert jnp.allclose(loss32, ref_loss, rtol=1e-3, atol=2e-3), "f32 loss"

    # 2) bf16 weights + bf16 exp (v6e/v7x EUP path; still correct elsewhere),
    # loss-only -> the (N, C) logits writeback is skipped entirely.
    loss16, no_logits = oim_loss(inputs, targets, lut, cq, class_weight,
                                 scalar=SCALAR, w_dtype=jnp.bfloat16,
                                 exp_dtype=jnp.bfloat16, return_logits=False,
                                 tile_n=8, tile_c=128)
    jax.block_until_ready(loss16)
    assert no_logits is None
    assert jnp.allclose(loss16, ref_loss, rtol=5e-2, atol=1e-1), "bf16 loss"

    # TODO(synk): the OIM lut/cq momentum updates and circular-queue header
    # advance are Python-stateful side effects of the original autograd
    # Function / module (not part of the returned forward values); not modeled.

    print("KERNEL_OK")
</pallas_src>

<mosaic_0001>
module attributes {stable_mosaic.version = 11 : i64} {
  func.func @_oim_kernel(%arg0: i32, %arg1: i32, %arg2: memref<8x32xf32, #tpu.memory_space<vmem>>, %arg3: memref<32x128xf32, #tpu.memory_space<vmem>>, %arg4: memref<8x1xi32, #tpu.memory_space<vmem>>, %arg5: memref<8x1xf32, #tpu.memory_space<vmem>>, %arg6: memref<8x128xf32, #tpu.memory_space<vmem>>, %arg7: memref<8x1xf32, #tpu.memory_space<vmem>>, %arg8: memref<8x1xf32, #tpu.memory_space<vmem>>, %arg9: memref<8x1xf32, #tpu.memory_space<vmem>>, %arg10: memref<8x1xf32, #tpu.memory_space<vmem>>, %arg11: memref<8x1xf32, #tpu.memory_space<vmem>>) attributes {dimension_semantics = [#tpu.dimension_semantics<parallel>, #tpu.dimension_semantics<arbitrary>], iteration_bounds = array<i64: 2, 3>, scalar_prefetch = 0 : i64, scratch_operands = 3 : i64, tpu.core_type = #tpu.core_type<tc>, window_params = [{transform_indices = @transform_0, window_bounds = array<i64: 8, 32>}, {transform_indices = @transform_1, window_bounds = array<i64: 32, 128>}, {transform_indices = @transform_2, window_bounds = array<i64: 8, 1>}, {transform_indices = @transform_3, window_bounds = array<i64: 8, 1>}, {transform_indices = @transform_4, window_bounds = array<i64: 8, 128>}, {transform_indices = @transform_5, window_bounds = array<i64: 8, 1>}, {transform_indices = @transform_6, window_bounds = array<i64: 8, 1>}]} {
    %c0_i32 = arith.constant 0 : i32
    %0 = arith.cmpi eq, %arg1, %c0_i32 : i32
    %1 = arith.extui %0 : i1 to i32
    %c0_i32_0 = arith.constant 0 : i32
    %2 = arith.cmpi ne, %1, %c0_i32_0 : i32
    scf.if %2 {
      %cst_19 = arith.constant 0xFF800000 : f32
      %31 = vector.broadcast %cst_19 : f32 to vector<8x1xf32>
      %c0_20 = arith.constant 0 : index
      %c0_21 = arith.constant 0 : index
      %32 = vector.load %arg9[%c0_20, %c0_21] : memref<8x1xf32, #tpu.memory_space<vmem>>, vector<8x1xf32>
      tpu.vector_store %arg9[%c0_20, %c0_21], %31 {strides = array<i32>} : memref<8x1xf32, #tpu.memory_space<vmem>>, vector<8x1xf32>,
      %cst_22 = arith.constant 0.000000e+00 : f32
      %33 = vector.broadcast %cst_22 : f32 to vector<8x1xf32>
      %c0_23 = arith.constant 0 : index
      %c0_24 = arith.constant 0 : index
      %34 = vector.load %arg10[%c0_23, %c0_24] : memref<8x1xf32, #tpu.memory_space<vmem>>, vector<8x1xf32>
      tpu.vector_store %arg10[%c0_23, %c0_24], %33 {strides = array<i32>} : memref<8x1xf32, #tpu.memory_space<vmem>>, vector<8x1xf32>,
      %cst_25 = arith.constant 0.000000e+00 : f32
      %35 = vector.broadcast %cst_25 : f32 to vector<8x1xf32>
      %c0_26 = arith.constant 0 : index
      %c0_27 = arith.constant 0 : index
      %36 = vector.load %arg11[%c0_26, %c0_27] : memref<8x1xf32, #tpu.memory_space<vmem>>, vector<8x1xf32>
      tpu.vector_store %arg11[%c0_26, %c0_27], %35 {strides = array<i32>} : memref<8x1xf32, #tpu.memory_space<vmem>>, vector<8x1xf32>,
    } else {
    }
    %c0 = arith.constant 0 : index
    %c0_1 = arith.constant 0 : index
    %3 = vector.load %arg2[%c0, %c0_1] : memref<8x32xf32, #tpu.memory_space<vmem>>, vector<8x32xf32>
    %c0_2 = arith.constant 0 : index
    %c0_3 = arith.constant 0 : index
    %4 = vector.load %arg3[%c0_2, %c0_3] : memref<32x128xf32, #tpu.memory_space<vmem>>, vector<32x128xf32>
    %cst = arith.constant dense<0.000000e+00> : vector<8x128xf32>
    %5 = tpu.matmul %3, %4, %cst {dimension_numbers = #tpu.dot_dimension_numbers<[1], [0], [0], [1], [0, 0, 1, 1], [], []>} : vector<8x32xf32>, vector<32x128xf32>, vector<8x128xf32> -> vector<8x128xf32>
    %c0_4 = arith.constant 0 : index
    %c0_5 = arith.constant 0 : index
    %6 = vector.load %arg6[%c0_4, %c0_5] : memref<8x128xf32, #tpu.memory_space<vmem>>, vector<8x128xf32>
    tpu.vector_store %arg6[%c0_4, %c0_5], %5 {strides = array<i32>} : memref<8x128xf32, #tpu.memory_space<vmem>>, vector<8x128xf32>,
    %c128_i32 = arith.constant 128 : i32
    %7 = arith.muli %arg1, %c128_i32 : i32
    %8 = tpu.iota {dimensions = array<i32: 1>} : vector<1x128xi32>
    %9 = vector.broadcast %7 : i32 to vector<1x128xi32>
    %10 = arith.addi %9, %8 : vector<1x128xi32>
    %c0_6 = arith.constant 0 : index
    %c0_7 = arith.constant 0 : index
    %11 = vector.load %arg11[%c0_6, %c0_7] : memref<8x1xf32, #tpu.memory_space<vmem>>, vector<8x1xf32>
    %c0_8 = arith.constant 0 : index
    %c0_9 = arith.constant 0 : index
    %12 = vector.load %arg4[%c0_8, %c0_9] : memref<8x1xi32, #tpu.memory_space<vmem>>, vector<8x1xi32>
    %13 = vector.broadcast %10 : vector<1x128xi32> to vector<8x128xi32>
    %14 = vector.broadcast %12 : vector<8x1xi32> to vector<8x128xi32>
    %15 = arith.cmpi eq, %13, %14 : vector<8x128xi32>
    %cst_10 = arith.constant 0.000000e+00 : f32
    %16 = vector.broadcast %cst_10 : f32 to vector<8x128xf32>
    %17 = arith.select %15, %5, %16 : vector<8x128xi1>, vector<8x128xf32>
    %cst_11 = arith.constant dense<0.000000e+00> : vector<8xf32>
    %18 = vector.multi_reduction <add>, %17, %cst_11 [1] : vector<8x128xf32> to vector<8xf32>
    %19 = vector.shape_cast %18 : vector<8xf32> to vector<8x1xf32>
    %20 = arith.addf %11, %19 : vector<8x1xf32>
    %c0_12 = arith.constant 0 : index
    %c0_13 = arith.constant 0 : index
    %21 = vector.load %arg11[%c0_12, %c0_13] : memref<8x1xf32, #tpu.memory_space<vmem>>, vector<8x1xf32>
    tpu.vector_store %arg11[%c0_12, %c0_13], %20 {strides = array<i32>} : memref<8x1xf32, #tpu.memory_space<vmem>>, vector<8x1xf32>,
    %c2_i32 = arith.constant 2 : i32
    %22 = arith.cmpi ne, %arg1, %c2_i32 : i32
    %23 = arith.extui %22 : i1 to i32
    %c0_i32_14 = arith.constant 0 : i32
    %24 = arith.cmpi ne, %23, %c0_i32_14 : i32
    scf.if %24 {
      %c0_19 = arith.constant 0 : index
      %c0_20 = arith.constant 0 : index
      %31 = vector.load %arg9[%c0_19, %c0_20] : memref<8x1xf32, #tpu.memory_space<vmem>>, vector<8x1xf32>
      %cst_21 = arith.constant dense<0xFF800000> : vector<8xf32>
      %32 = vector.multi_reduction <maximumf>, %5, %cst_21 [1] : vector<8x128xf32> to vector<8xf32>
      %33 = vector.shape_cast %32 : vector<8xf32> to vector<8x1xf32>
      %34 = arith.maximumf %31, %33 : vector<8x1xf32>
      %35 = arith.subf %31, %34 : vector<8x1xf32>
      %36 = math.exp %35 : vector<8x1xf32>
      %37 = vector.broadcast %34 : vector<8x1xf32> to vector<8x128xf32>
      %38 = arith.subf %5, %37 : vector<8x128xf32>
      %39 = math.exp %38 : vector<8x128xf32>
      %c0_22 = arith.constant 0 : index
      %c0_23 = arith.constant 0 : index
      %40 = vector.load %arg10[%c0_22, %c0_23] : memref<8x1xf32, #tpu.memory_space<vmem>>, vector<8x1xf32>
      %41 = arith.mulf %36, %40 : vector<8x1xf32>
      %cst_24 = arith.constant dense<0.000000e+00> : vector<8xf32>
      %42 = vector.multi_reduction <add>, %39, %cst_24 [1] : vector<8x128xf32> to vector<8xf32>
      %43 = vector.shape_cast %42 : vector<8xf32> to vector<8x1xf32>
      %44 = arith.addf %41, %43 : vector<8x1xf32>
      %c0_25 = arith.constant 0 : index
      %c0_26 = arith.constant 0 : index
      %45 = vector.load %arg10[%c0_25, %c0_26] : memref<8x1xf32, #tpu.memory_space<vmem>>, vector<8x1xf32>
      tpu.vector_store %arg10[%c0_25, %c0_26], %44 {strides = array<i32>} : memref<8x1xf32, #tpu.memory_space<vmem>>, vector<8x1xf32>,
      %c0_27 = arith.constant 0 : index
      %c0_28 = arith.constant 0 : index
      %46 = vector.load %arg9[%c0_27, %c0_28] : memref<8x1xf32, #tpu.memory_space<vmem>>, vector<8x1xf32>
      tpu.vector_store %arg9[%c0_27, %c0_28], %34 {strides = array<i32>} : memref<8x1xf32, #tpu.memory_space<vmem>>, vector<8x1xf32>,
    } else {
    }
    %c2_i32_15 = arith.constant 2 : i32
    %25 = arith.cmpi eq, %arg1, %c2_i32_15 : i32
    %26 = arith.extui %25 : i1 to i32
    %c0_i32_16 = arith.constant 0 : i32
    %27 = arith.cmpi ne, %26, %c0_i32_16 : i32
    scf.if %27 {
      %c257_i32 = arith.constant 257 : i32
      %31 = vector.broadcast %c257_i32 : i32 to vector<1x128xi32>
      %32 = arith.cmpi slt, %10, %31 : vector<1x128xi32>
      %cst_19 = arith.constant 0xFF800000 : f32
      %33 = vector.shape_cast %32 : vector<1x128xi1> to vector<1x128xi1>
      %34 = vector.broadcast %33 : vector<1x128xi1> to vector<8x128xi1>
      %35 = vector.broadcast %cst_19 : f32 to vector<8x128xf32>
      %36 = arith.select %34, %5, %35 : vector<8x128xi1>, vector<8x128xf32>
      %c0_20 = arith.constant 0 : index
      %c0_21 = arith.constant 0 : index
      %37 = vector.load %arg9[%c0_20, %c0_21] : memref<8x1xf32, #tpu.memory_space<vmem>>, vector<8x1xf32>
      %cst_22 = arith.constant dense<0xFF800000> : vector<8xf32>
      %38 = vector.multi_reduction <maximumf>, %36, %cst_22 [1] : vector<8x128xf32> to vector<8xf32>
      %39 = vector.shape_cast %38 : vector<8xf32> to vector<8x1xf32>
      %40 = arith.maximumf %37, %39 : vector<8x1xf32>
      %41 = arith.subf %37, %40 : vector<8x1xf32>
      %42 = math.exp %41 : vector<8x1xf32>
      %43 = vector.broadcast %40 : vector<8x1xf32> to vector<8x128xf32>
      %44 = arith.subf %36, %43 : vector<8x128xf32>
      %45 = math.exp %44 : vector<8x128xf32>
      %c0_23 = arith.constant 0 : index
      %c0_24 = arith.constant 0 : index
      %46 = vector.load %arg10[%c0_23, %c0_24] : memref<8x1xf32, #tpu.memory_space<vmem>>, vector<8x1xf32>
      %47 = arith.mulf %42, %46 : vector<8x1xf32>
      %cst_25 = arith.constant dense<0.000000e+00> : vector<8xf32>
      %48 = vector.multi_reduction <add>, %45, %cst_25 [1] : vector<8x128xf32> to vector<8xf32>
      %49 = vector.shape_cast %48 : vector<8xf32> to vector<8x1xf32>
      %50 = arith.addf %47, %49 : vector<8x1xf32>
      %c0_26 = arith.constant 0 : index
      %c0_27 = arith.constant 0 : index
      %51 = vector.load %arg10[%c0_26, %c0_27] : memref<8x1xf32, #tpu.memory_space<vmem>>, vector<8x1xf32>
      tpu.vector_store %arg10[%c0_26, %c0_27], %50 {strides = array<i32>} : memref<8x1xf32, #tpu.memory_space<vmem>>, vector<8x1xf32>,
      %c0_28 = arith.constant 0 : index
      %c0_29 = arith.constant 0 : index
      %52 = vector.load %arg9[%c0_28, %c0_29] : memref<8x1xf32, #tpu.memory_space<vmem>>, vector<8x1xf32>
      tpu.vector_store %arg9[%c0_28, %c0_29], %40 {strides = array<i32>} : memref<8x1xf32, #tpu.memory_space<vmem>>, vector<8x1xf32>,
    } else {
    }
    %c2_i32_17 = arith.constant 2 : i32
    %28 = arith.cmpi eq, %arg1, %c2_i32_17 : i32
    %29 = arith.extui %28 : i1 to i32
    %c0_i32_18 = arith.constant 0 : i32
    %30 = arith.cmpi ne, %29, %c0_i32_18 : i32
    scf.if %30 {
      %c0_19 = arith.constant 0 : index
      %c0_20 = arith.constant 0 : index
      %31 = vector.load %arg9[%c0_19, %c0_20] : memref<8x1xf32, #tpu.memory_space<vmem>>, vector<8x1xf32>
      %c0_21 = arith.constant 0 : index
      %c0_22 = arith.constant 0 : index
      %32 = vector.load %arg10[%c0_21, %c0_22] : memref<8x1xf32, #tpu.memory_space<vmem>>, vector<8x1xf32>
      %33 = math.log %32 : vector<8x1xf32>
      %34 = arith.addf %31, %33 : vector<8x1xf32>
      %c0_23 = arith.constant 0 : index
      %c0_24 = arith.constant 0 : index
      %35 = vector.load %arg11[%c0_23, %c0_24] : memref<8x1xf32, #tpu.memory_space<vmem>>, vector<8x1xf32>
      %36 = arith.subf %34, %35 : vector<8x1xf32>
      %c0_25 = arith.constant 0 : index
      %c0_26 = arith.constant 0 : index
      %37 = vector.load %arg5[%c0_25, %c0_26] : memref<8x1xf32, #tpu.memory_space<vmem>>, vector<8x1xf32>
      %38 = arith.mulf %37, %36 : vector<8x1xf32>
      %c0_27 = arith.constant 0 : index
      %c0_28 = arith.constant 0 : index
      %39 = vector.load %arg7[%c0_27, %c0_28] : memref<8x1xf32, #tpu.memory_space<vmem>>, vector<8x1xf32>
      tpu.vector_store %arg7[%c0_27, %c0_28], %38 {strides = array<i32>} : memref<8x1xf32, #tpu.memory_space<vmem>>, vector<8x1xf32>,
      %c0_29 = arith.constant 0 : index
      %c0_30 = arith.constant 0 : index
      %40 = vector.load %arg8[%c0_29, %c0_30] : memref<8x1xf32, #tpu.memory_space<vmem>>, vector<8x1xf32>
      tpu.vector_store %arg8[%c0_29, %c0_30], %37 {strides = array<i32>} : memref<8x1xf32, #tpu.memory_space<vmem>>, vector<8x1xf32>,
    } else {
    }
    return
  }
  func.func @transform_0(%arg0: i32, %arg1: i32) -> (i32, i32) {
    %c0_i32 = arith.constant 0 : i32
    %c0_i32_0 = arith.constant 0 : i32
    return %arg0, %c0_i32 : i32, i32
  }
  func.func @transform_1(%arg0: i32, %arg1: i32) -> (i32, i32) {
    %c0_i32 = arith.constant 0 : i32
    %c0_i32_0 = arith.constant 0 : i32
    return %c0_i32, %arg1 : i32, i32
  }
  func.func @transform_2(%arg0: i32, %arg1: i32) -> (i32, i32) {
    %c0_i32 = arith.constant 0 : i32
    %c0_i32_0 = arith.constant 0 : i32
    return %arg0, %c0_i32 : i32, i32
  }
  func.func @transform_3(%arg0: i32, %arg1: i32) -> (i32, i32) {
    %c0_i32 = arith.constant 0 : i32
    %c0_i32_0 = arith.constant 0 : i32
    return %arg0, %c0_i32 : i32, i32
  }
  func.func @transform_4(%arg0: i32, %arg1: i32) -> (i32, i32) {
    %c0_i32 = arith.constant 0 : i32
    return %arg0, %arg1 : i32, i32
  }
  func.func @transform_5(%arg0: i32, %arg1: i32) -> (i32, i32) {
    %c0_i32 = arith.constant 0 : i32
    %c0_i32_0 = arith.constant 0 : i32
    return %arg0, %c0_i32 : i32, i32
  }
  func.func @transform_6(%arg0: i32, %arg1: i32) -> (i32, i32) {
    %c0_i32 = arith.constant 0 : i32
    %c0_i32_0 = arith.constant 0 : i32
    return %arg0, %c0_i32 : i32, i32
  }
}

</mosaic_0001>

<bundles_post_ra>
// kernel: tpu_custom_call.1
= control target key start
LH: loop header
LB: loop body
LE: loop exit
PB: predicated region body
PF: predicated region fallthrough
CT: control target
= control target key end

     0   :  { %s1374_s0 = inlined_call_operand.vmem [shape: f32[10,32], index: 0, kind: input, shape index: {}]   ;;  %s1375_s1 = inlined_call_operand.hbm [shape: f32[32,257], index: 1, kind: input, shape index: {}]   ;;  %s1376_s2 = inlined_call_operand.vmem [shape: s32[10,1], index: 2, kind: input, shape index: {}]   ;;  %s1377_s3 = inlined_call_operand.vmem [shape: f32[10,1], index: 3, kind: input, shape index: {}]   ;;  %s1378_s4 = inlined_call_operand.hbm [shape: f32[10,257], index: 4, kind: output, shape index: {0}]   ;;  %s1379_s5 = inlined_call_operand.vmem [shape: f32[10,1], index: 5, kind: output, shape index: {1}]   ;;  %s1380_s6 = inlined_call_operand.vmem [shape: f32[10,1], index: 6, kind: output, shape index: {2}]  }
   0x1   :  { %1389 = sst [smem:[#allocation19_spill]] %s1375_s1 }
   0x2   :  { %12 = vsyncpa [#allocation6], 0 }
   0x3   :  { %14 = vsyncpa [#allocation6 + $0x1], 0 }
   0x4   :  { %15 = vsyncpa [#allocation7], 0 }
   0x5   :  { %17 = vsyncpa [#allocation7 + $0x1], 0  ;;  %s1098_s21 = smov 0   ;;  %s1100_s22 = smov 0  }
   0x6   :  { %s1102_s23 = smov 0   ;;  %s1104_s24 = smov 0  }
   0x7   :  { %s1106_s25 = smov 0   ;;  %s1108_s26 = smov 0  }
   0x8   :  { %s1110_s27 = smov 0   ;;  %s1112_s28 = smov 0  }
   0x9   :  { %s1114_s29 = smov 0   ;;  %s1116_s30 = smov 0  }
   0xa   :  { %s1118_s7 = smov 0  }
   0xb LB: > { %1390 = sst [smem:[#allocation11_spill]] %s1024_s25  ;;  %s724_s8 = sadd.s32 4294967295, %s1048_s7   ;;  %s1048_s7 = sphi %s1118_s7, %s23_s7   ;;  %s1044_s30 = sphi %s1116_s30, %s1414_s30   ;;  %s1040_s29 = sphi %s1114_s29, %s1413_s29   ;;  %s1036_s28 = sphi %s1112_s28, %s1412_s28   ;;  %s1032_s27 = sphi %s1110_s27, %s1411_s27   ;;  %s1028_s26 = sphi %s1108_s26, %s1410_s26   ;;  %s1024_s25 = sphi %s1106_s25, %s1409_s25   ;;  %s1020_s24 = sphi %s1104_s24, %s1408_s24   ;;  %s1016_s23 = sphi %s1102_s23, %s1417_s23   ;;  %s1012_s22 = sphi %s1100_s22, %s1416_s22   ;;  %s1008_s21 = sphi %s1098_s21, %s1415_s21  }
   0xc   : > { %1391 = sst [smem:[#allocation12_spill]] %s1028_s26  ;;  %s725_s9 = sadd.s32 4294967294, %s1048_s7  }
   0xd   : > { %1392 = sst [smem:[#allocation13_spill]] %s1040_s29  ;;  %s32_s10 = sadd.s32 1, %s1040_s29 }
   0xe   : > { %1393 = sst [smem:[#allocation14_spill]] %s1044_s30  ;;  %s35_s11 = sadd.s32 1, %s1044_s30 }
   0xf   : > { %p33_p0 = scmp.ge.s32.totalorder %s32_s10, 3  ;;  %s68_s12 = sadd.s32 1, %s1028_s26 }
  0x10   : > { %p75_p1 = scmp.ne.s32.totalorder %s1028_s26, %s1024_s25  ;;  %p76_p2 = scmp.eq.s32.totalorder %s1048_s7, 0 }
  0x11   : > { %s1419_s10 = smov (%p33_p0, %s32_s10), 0  ;;  %s1421_s11 = smov (!%p33_p0, %s35_s11), %s1044_s30 }
  0x12   : > { %1394 = sst [smem:[#allocation15_spill]] %s1419_s10  ;;  %s65_s13 = ssub.s32 %s1040_s29, %s1419_s10 }
  0x13   : > { %p1164_p3 = por %p76_p2, %p75_p1  ;;  %p37_p4 = scmp.ge.s32.totalorder %s1421_s11, 2 }
  0x14   : > { %p66_p5 = scmp.eq.s32.totalorder %s65_s13, 0  ;;  %p81_p6 = scmp.ne.s32.totalorder %s1024_s25, %s1020_s24 }
  0x15   : > { %p82_p7 = scmp.eq.s32.totalorder %s724_s8, 0  ;;  %s1423_s11 = smov (%p37_p4, %s1421_s11), 0 }
  0x16   : > { %1396 = sst [smem:[#allocation16_spill]] %s1423_s11  ;;  %s143_s17 = ssub.s32 %s1044_s30, %s1423_s11 }
  0x17   : > { %s1172_s15 = scalar_select %p66_p5, %s1028_s26, %s68_s12  }
  0x18   : > { %p1174_p8 = por %p82_p7, %p81_p6  ;;  %s145_s18 = sor.u32 %s143_s17, %s65_s13 }
  0x19   : > { %1397 = sst [smem:[#allocation17_spill]] %s1172_s15  ;;  %s148_s19 = sadd.s32 1, %s1016_s23 }
  0x1a   : > { %p146_p9 = scmp.eq.s32.totalorder %s145_s18, 0  ;;  %p158_p10 = scmp.ne.s32.totalorder %s1016_s23, %s1012_s22 }
  0x1b   : > { %p159_p11 = scmp.eq.s32.totalorder %s724_s8, 5  ;;  %p164_p12 = scmp.ne.s32.totalorder %s1012_s22, %s1008_s21 }
  0x1c   : > { %s1186_s20 = scalar_select %p146_p9, %s1016_s23, %s148_s19  }
  0x1d   : > { %p1188_p13 = por %p159_p11, %p158_p10  ;;  %p165_p0 = scmp.eq.s32.totalorder %s725_s9, 5 }
  0x1e   : > { %1399 = sst [smem:[#allocation18_spill]] %s1186_s20  ;;  %p782_p1 = scmp.lt.s32.totalorder %s1048_s7, 6 }
  0x1f   : > { %s1400_s24 = scalar_select %p1188_p13, 1, 0 }
  0x20   : > { %p1193_p2 = por %p165_p0, %p164_p12  ;;  %s244_s11 = sand.u32 1, %s1028_s26  }
  0x21   : > { %s728_s13 = sshll.u32 %s244_s11, 5  ;;  %s729_s17 = sshll.u32 %s1040_s29, 7 }
  0x22   : > { %s1401_s12 = scalar_select %p1193_p2, 1, 0 }
  0x23   : > { %s1402_s1 = sld [smem:[#allocation19_spill]]  ;;  %s248_s19 = scalar_lea.vmem [#allocation5], %s728_s13 }
  0x24   : > { %s254_s30 = sshll.u32 %s248_s19, 4  ;;  %p1208_p4 = pnand %p782_p1, %p1164_p3  ;;  %s1204_s30 = int_to_ptr.vmem [resolvable:$true] %s254_s30 }
  0x25   : > { %s1212_s29 = scalar_lea.sflag [#allocation6], %s244_s11 }
  0x26   : > { %p898_p6 = pneg %p1208_p4 }
  0x29   : > { %s1202_s8 = scalar_lea.hbm %s1402_s1, %s729_s17  ;;  %s901_s14 = scalar_lea.hbm %s1402_s1, 1536 }
  0x2a   : > { %s896_s10 = scalar_lea.hbm %s1202_s8, 512  ;;  %p902_p3 = scmp.lt.u32.totalorder %s1202_s8, %s1402_s1 }
  0x2b   : > { %p897_p5 = scmp.ne.s32.totalorder %s1202_s8, %s896_s10  ;;  %p903_p10 = scmp.lt.u32.totalorder %s901_s14, %s896_s10 }
  0x2c   : > { %p905_p12 = scmp.lt.u32.totalorder %s896_s10, %s1202_s8 }
  0x2d   : > { %p899_p7 = pnand %p898_p6, %p897_p5  ;;  %p904_p11 = por %p903_p10, %p902_p3 }
  0x2f   : > { %p900_p9 = pneg %p899_p7  ;;  %p906_p0 = por %p905_p12, %p904_p11 }
  0x31   : > { %p907_p1 = pnand %p906_p0, %p900_p9 }
  0x33   : > { %910 = shalt.err (!%p907_p1)
}
  0x34   : > { %s911_s11 = scalar_lea.vmem %s1204_s30, 512  ;;  %s1050_s13 = smov [#allocation5]  }
  0x35   : > { %p912_p5 = scmp.ne.s32.totalorder %s1204_s30, %s911_s11  ;;  %s916_s17 = sshll.u32 %s1050_s13, 4  ;;  %s917_s17 = int_to_ptr.vmem [resolvable:$false] %s916_s17 }
  0x36   : > { %s918_s18 = scalar_lea.vmem %s917_s17, 1024  ;;  %p919_p13 = scmp.lt.s32.totalorder %s1204_s30, %s917_s17 }
  0x37   : > { %p914_p7 = pnand %p912_p5, %p898_p6  ;;  %p920_p3 = scmp.lt.s32.totalorder %s918_s18, %s911_s11 }
  0x39   : > { %p915_p2 = pneg %p914_p7  ;;  %p921_p10 = por %p920_p3, %p919_p13 }
  0x3b   : > { %p922_p11 = pnand %p921_p10, %p915_p2 }
  0x3d   : > { %925 = shalt.err (!%p922_p11)
}
  0x3e   : > { %s1051_s10 = smov 384   ;;  %s1052_s14 = smov 128  }
  0x3f   : > { %s1053_s19 = smov 8   ;;  %p730_p6 = scmp.ge.s32.totalorder %s1048_s7, 1 }
  0x40   : > { %777 = dma.hbm_to_vmem [thread:$0]  (!%p1208_p4), %s1202_s8, 512, %s1204_s30, %s1212_s29, %s1051_s10, %s1052_s14, %s1053_s19  }
  0x41   : > { %p276_p9 = scmp.lt.s32.totalorder %s1048_s7, 7 }
  0x43   : > { %p277_p12 = pnand %p730_p6, %p276_p9 }
  0x44   : > { %s282_s11 = sand.u32 (!%p277_p12), 1, %s1024_s25  }
  0x45   : > { %280 = sbr.rel (%p277_p12) target bundleno = 1235 (0x4d3), region = 36  ;;  %s731_s13 = sshll.u32 (!%p277_p12), %s282_s11, 5 }
  0x46   : > { %s283_s17 = scalar_lea.sflag (!%p277_p12), [#allocation6], %s282_s11  ;;  %s286_s18 = scalar_lea.vmem (!%p277_p12), [#allocation5], %s731_s13 }
  0x4c   : > { %999 = dma.done.wait (%p1174_p8), %s283_s17, 512  }
  0x4d   : > { %1001 = vsyncadd (%p1174_p8), %s283_s17, 4294966784  ;;  %s1386_s29 = sand.u32 1, %s1012_s22   ;;  %p335_p13 = scmp.lt.s32.totalorder %s1036_s28, 1 }
  0x4e   : > { %s1251_s30 = sshll.u32 %s1386_s29, 3  ;;  %p738_p8 = scmp.ne.s32.totalorder %s1032_s27, 0 }
  0x4f   : > { %s336_s8 = scalar_select %p335_p13, %s1036_s28, 1 }
  0x50   : > { %s322_s14 = scalar_lea.vmem [#allocation8], %s1251_s30  ;;  %358 = sbr.rel (%p738_p8) target bundleno = 87 (0x57), region = 44  ;;  %vm359_vm0 = vcmask (!%p738_p8), 7168   ;;  %v1054_v0 = vmov (!%p738_p8), -inf   ;;  %v1055_v1 = vmov (!%p738_p8), 0.0  }
  0x51   : > { %s1254_s9 = sshll.u32 %s336_s8, 3  ;;  %360 = vst.msk [vmem:[#allocation2] sm:$0xff] (!%p738_p8), %vm359_vm0, %v1054_v0  ;;  %361 = vst.msk [vmem:[#allocation3] sm:$0xff] (!%p738_p8), %vm359_vm0, %v1055_v1 }
  0x52   : > { %s338_s16 = scalar_lea.vmem %s1374_s0, %s1254_s9  ;;  %s342_s13 = scalar_lea.vmem %s1376_s2, %s1254_s9  ;;  %362 = vst.msk [vmem:[#allocation4] sm:$0xff] (!%p738_p8), %vm359_vm0, %v1055_v1 }
  0x53   : > { %s346_s1 = scalar_lea.vmem %s1377_s3, %s1254_s9  ;;  %s350_s26 = scalar_lea.vmem %s1379_s5, %s1254_s9 }
  0x54   : > { %s354_s10 = scalar_lea.vmem %s1380_s6, %s1254_s9 }
  0x57 PF: > { %v364_v2 = vld [vmem:[%s286_s18] sm:$0xff]  ;;  %v365_v3 = vld [vmem:[%s286_s18 + $0x8] sm:$0xff]  ;;  %v366_v4 = vld [vmem:[%s286_s18 + $0x10] sm:$0xff]  ;;  %v1056_v5 = vmov 0.0|0.0   ;;  %vm1057_vm1 = vmmov 0   ;;  %v1058_v8 = vmov 0.0   ;;  %v444_v13 = vlaneseq }
  0x58   : > { %763 = vmatprep.subr.bf16.mxu0 %v1056_v5  ;;  %v764_v6 = vpack.c.bf16 %v365_v3, %v364_v2  ;;  %v367_v7 = vld [vmem:[%s286_s18 + $0x18] sm:$0xff]  ;;  %760 = vmatprep.mubr.msk.f32.mxu0 %vm1057_vm1, %v1058_v8  ;;  %v449_v9 = vld [vmem:[%s342_s13] sm:$0xff]  ;;  %v1059_v10 = vmov 0   ;;  %vm368_vm2 = vcmask 261120   ;;  %s740_s20 = sshll.u32 %s1032_s27, 7  ;;  %vm458_vm4 = vcmask 7168  }
  0x59   : > { %883 = vset.pattern.permute.xlu0 %v1059_v10  ;;  %v767_v11 = vpack.c.bf16 %v367_v7, %v366_v4  ;;  %v363_v12 = vld [vmem:[%s338_s16] sm:$0xff]  ;;  %v445_v14 = vand.u32 127, %v444_v13  ;;  %v446_v15 = vstv %s740_s20  ;;  %v448_v21 = vld [vmem:[#allocation4] sm:$0xff]  ;;  %p741_p2 = scmp.eq.s32.totalorder %s1032_s27, 2 }
  0x5a   : > { %765 = vmatpush3.bf16.msra.mxu0 %v764_v6  ;;  %451 = vperm.xlu0 %883, %v449_v9   ;;  %v1060_v24 = vmov (!%p741_p2), 0   ;;  %v464_v25 = vld [vmem:[#allocation2] sm:$0xff] (!%p741_p2)  ;;  %v479_v35 = vld [vmem:[#allocation3] sm:$0xff] (!%p741_p2) }
  0x5b   : > { %766 = vmatprep.subr.bf16.mxu0 %v1056_v5  ;;  %v447_v16 = vadd.s32 %v446_v15, %v445_v14 }
  0x5e   : > { %768 = vmatpush3.bf16.msra.mxu0 %v767_v11  ;;  %884 = vset.pattern.permute.xlu0 (!%p741_p2), %v1060_v24 }
  0x61   : > { %761 = vmatmul.mubr.msk.f32.vlgmr.msra.gmra.mrb[0].mxu0 %vm368_vm2, %v363_v12 }
  0xd9   : > { %v452_v17 = vpop.permute.xlu0 %451 }
  0xda   : > { %vm453_vm3 = vcmp.eq.s32.totalorder %v447_v16, %v452_v17 }
 0x134   : > { %v438_v18 = vpop.f32.mrb[0].mxu0 }
 0x135   : > { %442 = vst [vmem:[%s322_s14] sm:$0xff] %v438_v18  ;;  %v762_v19 = vpop.f32.mrb[1].mxu0  ;;  %v454_v20 = vsel %vm453_vm3, %v438_v18, 0.0 }
 0x136   : > { %455 = vadd.xlane.f32.xlu0 %v454_v20 }
 0x13a   : > { %465 = vmax.xlane.f32.xlu0 (!%p741_p2), %v438_v18 }
 0x1c0   : > { %463 = sbr.rel (%p741_p2) target bundleno = 746 (0x2ea), region = 48 }
 0x1c3   : > { %v456_v22 = vpop.xlane.xlu0 %455 }
 0x1c4   : > { %v457_v23 = vadd.f32 %v456_v22, %v448_v21 }
 0x1c6   : > { %459 = vst.msk [vmem:[#allocation4] sm:$0xff] %vm458_vm4, %v457_v23 }
 0x1c7   : > { %v466_v26 = vpop.xlane.xlu0 %465 }
 0x1c8   : > { %v467_v27 = vmax.f32 %v464_v25, %v466_v26 }
 0x1ca   : > { %v468_v28 = vsub.f32 %v464_v25, %v467_v27  ;;  %485 = vst.msk [vmem:[#allocation2] sm:$0xff] %vm458_vm4, %v467_v27  ;;  %473 = vperm.xlu0 %884, %v467_v27  }
 0x1cc   : > { %v469_v33 = vmul.f32 1.442695, %v468_v28 }
 0x249   : > { %v474_v29 = vpop.permute.xlu0 %473 }
 0x24a   : > { %v476_v30 = vsub.f32 %v438_v18, %v474_v29 }
 0x24c   : > { %v477_v31 = vmul.f32 1.442695, %v476_v30 }
 0x24e   : > { %885 = vpow2.f32 %v477_v31 }
 0x24f   : > { %887 = vpow2.f32 %v469_v33 }
 0x258   : > { %v886_v32 = vpop.eup %885 }
 0x259   : > { %481 = vadd.xlane.f32.xlu1 %v886_v32  ;;  %v888_v34 = vpop.eup %887 }
 0x25a   : > { %v480_v36 = vmul.f32 %v888_v34, %v479_v35 }
 0x2e6   : > { %v482_v37 = vpop.xlane.xlu1 %481 }
 0x2e7   : > { %v483_v38 = vadd.f32 %v482_v37, %v480_v36 }
 0x2e9   : > { %484 = vst.msk [vmem:[#allocation3] sm:$0xff] %vm458_vm4, %v483_v38 }
 0x2ea PF: > { %p742_p4 = scmp.ne.s32.totalorder %s1032_s27, 2 }
 0x2eb   : > { %vm490_vm5 = vcmp.lt.s32.totalorder (!%p742_p4), %v447_v16, 257  ;;  %v1061_v40 = vmov (!%p742_p4), 0   ;;  %v494_v41 = vld [vmem:[#allocation2] sm:$0xff] (!%p742_p4) }
 0x2ec   : > { %489 = sbr.rel (%p742_p4) target bundleno = 1208 (0x4b8), region = 52  ;;  %v493_v39 = vsel (!%p742_p4), %vm490_vm5, %v438_v18, -inf  ;;  %889 = vset.pattern.permute.xlu0 (!%p742_p4), %v1061_v40  ;;  %v523_v45 = vld [vmem:[%s346_s1] sm:$0xff] (!%p742_p4) }
 0x2ed   : > { %495 = vmax.xlane.f32.xlu0 (!%p742_p4), %v493_v39  ;;  %526 = vst.msk [vmem:[%s354_s10] sm:$0xff] (!%p742_p4), %vm458_vm4, %v523_v45 }
 0x2f0   : > { %v509_v52 = vld [vmem:[#allocation3] sm:$0xff] (!%p742_p4)  ;;  %v521_v60 = vld [vmem:[#allocation4] sm:$0xff] (!%p742_p4) }
 0x37a   : > { %v496_v42 = vpop.xlane.xlu0 %495 }
 0x37b   : > { %v497_v43 = vmax.f32 %v494_v41, %v496_v42 }
 0x37d   : > { %v498_v44 = vsub.f32 %v494_v41, %v497_v43  ;;  %515 = vst.msk [vmem:[#allocation2] sm:$0xff] %vm458_vm4, %v497_v43  ;;  %503 = vperm.xlu0 %889, %v497_v43  }
 0x37f   : > { %v499_v50 = vmul.f32 1.442695, %v498_v44 }
 0x384   : > { %v516_v59 = vld [vmem:[#allocation2] sm:$0xff] }
 0x3fc   : > { %v504_v46 = vpop.permute.xlu0 %503 }
 0x3fd   : > { %v506_v47 = vsub.f32 %v493_v39, %v504_v46 }
 0x3ff   : > { %v507_v48 = vmul.f32 1.442695, %v506_v47 }
 0x401   : > { %890 = vpow2.f32 %v507_v48 }
 0x402   : > { %892 = vpow2.f32 %v499_v50 }
 0x40b   : > { %v891_v49 = vpop.eup %890 }
 0x40c   : > { %511 = vadd.xlane.f32.xlu1 %v891_v49  ;;  %v893_v51 = vpop.eup %892 }
 0x40d   : > { %v510_v53 = vmul.f32 %v893_v51, %v509_v52 }
 0x499   : > { %v512_v54 = vpop.xlane.xlu1 %511 }
 0x49a   : > { %v513_v55 = vadd.f32 %v512_v54, %v510_v53 }
 0x49c   : > { %514 = vst.msk [vmem:[#allocation3] sm:$0xff] %vm458_vm4, %v513_v55 }
 0x4a3   : > { %v517_v56 = vld [vmem:[#allocation3] sm:$0xff] }
 0x4a4   : > { %894 = vlog2.f32 %v517_v56 }
 0x4ae   : > { %v895_v57 = vpop.eup %894 }
 0x4af   : > { %v519_v58 = vmul.f32 0.6931472, %v895_v57 }
 0x4b1   : > { %v520_v61 = vadd.f32 %v519_v58, %v516_v59 }
 0x4b3   : > { %v522_v62 = vsub.f32 %v520_v61, %v521_v60 }
 0x4b5   : > { %v524_v63 = vmul.f32 %v523_v45, %v522_v62 }
 0x4b7   : > { %525 = vst.msk [vmem:[%s350_s26] sm:$0xff] %vm458_vm4, %v524_v63 }
 0x4b8 PF: > { %s769_s13 = smul.u32 3, %s1036_s28  ;;  %s551_s17 = sshll.u32 %s322_s14, 4  ;;  %s1314_s17 = int_to_ptr.vmem [resolvable:$true] %s551_s17 }
 0x4b9   : > { %s1404_s9 = sand.u32 1, %s1012_s22   ;;  %s926_s18 = scalar_lea.vmem %s1314_s17, 128 }
 0x4ba   : > { %s547_s8 = sadd.s32 %s1032_s27, %s769_s13  ;;  %s528_s20 = scalar_lea.sflag [#allocation7], %s1404_s9 }
 0x4bb   : > { %s744_s10 = sshll.u32 %s547_s8, 7  ;;  %p927_p0 = scmp.ne.s32.totalorder %s1314_s17, %s926_s18 }
 0x4bc   : > { %s549_s26 = scalar_lea.hbm %s1378_s4, %s744_s10  ;;  %p1405_p1 = scmp.ne.s32.totalorder %s1400_s24, 0 }
 0x4bd   : > { %s1062_s28 = smov [#allocation8]  }
 0x4be   : > { %p928_p5 = pnand %p927_p0, %p1405_p1  ;;  %s930_s30 = sshll.u32 %s1062_s28, 4  ;;  %s931_s30 = int_to_ptr.vmem [resolvable:$false] %s930_s30 }
 0x4bf   : > { %s932_s27 = scalar_lea.vmem %s931_s30, 256  ;;  %p933_p3 = scmp.lt.s32.totalorder %s1314_s17, %s931_s30 }
 0x4c0   : > { %p929_p7 = pneg %p928_p5  ;;  %p934_p10 = scmp.lt.s32.totalorder %s932_s27, %s926_s18 }
 0x4c2   : > { %p935_p11 = por %p934_p10, %p933_p3 }
 0x4c4   : > { %p936_p6 = pnand %p935_p11, %p929_p7 }
 0x4c6   : > { %939 = shalt.err (!%p936_p6)
}
 0x4c7   : > { %s940_s14 = scalar_lea.hbm %s549_s26, 128  ;;  %s944_s19 = scalar_lea.hbm %s1378_s4, 768 }
 0x4c8   : > { %p941_p9 = scmp.ne.s32.totalorder %s549_s26, %s940_s14  ;;  %p945_p8 = scmp.lt.u32.totalorder %s549_s26, %s1378_s4 }
 0x4c9   : > { %p946_p2 = scmp.lt.u32.totalorder %s944_s19, %s940_s14  ;;  %p948_p0 = scmp.lt.u32.totalorder %s940_s14, %s549_s26 }
 0x4ca   : > { %p942_p12 = pnand %p941_p9, %p1405_p1 }
 0x4cb   : > { %p947_p4 = por %p946_p2, %p945_p8 }
 0x4cc   : > { %p943_p13 = pneg %p942_p12 }
 0x4cd   : > { %p949_p5 = por %p948_p0, %p947_p4 }
 0x4cf   : > { %p950_p7 = pnand %p949_p5, %p943_p13 }
 0x4d1   : > { %953 = shalt.err (!%p950_p7)
}
 0x4d2   : > { %772 = dma.vmem_to_hbm [thread:$0]  (%p1405_p1), %s1314_s17, 128, %s549_s26, %s528_s20  }
 0x4d3 PF: > { %p783_p3 = scmp.ge.s32.totalorder %s1048_s7, 2  ;;  %s569_s13 = sand.u32 1, %s1008_s21  }
 0x4d4   : > { %p1406_p10 = scmp.ne.s32.totalorder %s1401_s12, 0  ;;  %s570_s8 = scalar_lea.sflag [#allocation7], %s569_s13 }
 0x4d6   : > { %p779_p11 = pnand %p783_p3, %p1406_p10 }
 0x4d8   : > { %1003 = dma.done.wait (!%p779_p11), %s570_s8, 128  }
 0x4d9   : > { %1005 = vsyncadd (!%p779_p11), %s570_s8, 4294967168  ;;  %s23_s7 = sadd.s32 1, %s1048_s7   ;;  %s1407_s10 = sld [smem:[#allocation18_spill]] }
 0x4da   : > { %p20_p6 = scmp.ge.s32.totalorder %s23_s7, 8   ;;  %s1408_s24 = sld [smem:[#allocation11_spill]] }
 0x4db   : > { %s1409_s25 = sld [smem:[#allocation12_spill]]  ;;  %s1410_s26 = sld [smem:[#allocation17_spill]] }
 0x4dc   : > { %s1411_s27 = sld [smem:[#allocation13_spill]]  ;;  %s1412_s28 = sld [smem:[#allocation14_spill]] }
 0x4dd   : > { %s1413_s29 = sld [smem:[#allocation15_spill]]  ;;  %s1414_s30 = sld [smem:[#allocation16_spill]] }
 0x4de   : > { %s1415_s21 = smov %s1012_s22  ;;  %s1416_s22 = smov %s1016_s23 }
 0x4df   : > { %s1417_s23 = smov %s1407_s10  ;;  %22 = sbr.rel (!%p20_p6) target bundleno = 11 (0xb), region = 126 }
 0x4e6   :  { %589 = vsyncpa [#allocation6], 1 }
 0x4e7   :  { %591 = vsyncpa [#allocation6 + $0x1], 1 }
 0x4e8   :  { %592 = vsyncpa [#allocation7], 1 }
 0x4e9   :  { %594 = vsyncpa [#allocation7 + $0x1], 1 }

</bundles_post_ra>
